<compile_context>
chip_gen: v6e
topology: v6e:2x2x1
jax: 0.10.0
libtpu: 0.0.40
codegen_flags: <defaults>
</compile_context>

<pallas_src>
import math

import jax
import jax.numpy as jnp
from jax.experimental import pallas as pl
from jax.experimental.pallas import tpu as pltpu


# ---------------------------------------------------------------------------
# Parameter setup (plain JAX): sinusoidal table, shape (max_len, d_model)
# ---------------------------------------------------------------------------
def _build_pe(d_model: int, max_len: int) -> jnp.ndarray:
    position = jnp.arange(0, max_len, dtype=jnp.float32)[:, None]          # (max_len, 1)
    div_term = jnp.exp(
        jnp.arange(0, d_model, 2, dtype=jnp.float32) * (-math.log(10000.0) / d_model)
    )                                                                      # (ceil(d/2),)
    angles = position * div_term                                           # (max_len, ceil(d/2))
    pe = jnp.zeros((max_len, d_model), dtype=jnp.float32)
    pe = pe.at[:, 0::2].set(jnp.sin(angles))
    pe = pe.at[:, 1::2].set(jnp.cos(angles[:, : d_model // 2]))
    return pe


# ---------------------------------------------------------------------------
# Small integer helpers
# ---------------------------------------------------------------------------
def _cdiv(a: int, b: int) -> int:
    return -(-a // b)


def _round_up(a: int, m: int) -> int:
    return _cdiv(a, m) * m


def _round_down(a: int, m: int) -> int:
    return (a // m) * m


def _tile_budget_bytes() -> int:
    """Per-buffer tile budget (bytes), sized so peak VMEM ~= 6 * budget.

    x-in and out are each double-buffered (4 buffers) plus a pe tile of at most
    the same padded footprint (x2 buffers):
      * v6e / v7x (32 MiB scoped default): 4 MiB/buffer -> ~24 MiB peak.
      * v5e & unknown  (16 MiB scoped default): 2 MiB/buffer -> ~12 MiB peak.
    """
    try:
        kind = jax.devices()[0].device_kind.lower()
    except Exception:
        kind = ""
    if ("v6" in kind) or ("v7" in kind) or ("7x" in kind):
        return 4 * 1024 * 1024
    return 2 * 1024 * 1024


# ---------------------------------------------------------------------------
# Kernel: elementwise add of the (broadcast) positional-encoding tile
# ---------------------------------------------------------------------------
def _add_pe_kernel(x_ref, pe_ref, o_ref):
    # Pure VPU add.  pe_ref broadcasts over the batch dim of the x tile:
    #   flat path: (tb, tl) + (1, tl);   rows path: (1, ts, D) + (ts, D).
    o_ref[...] = x_ref[...] + pe_ref[...]


# ---------------------------------------------------------------------------
# "rows" path: B < 8 and D % 128 == 0  ->  tile (1, ts, D) blocks of 3-D x
# ---------------------------------------------------------------------------
def _forward_rows(x: jnp.ndarray, pe: jnp.ndarray, budget: int) -> jnp.ndarray:
    B, S, D = x.shape
    itemsize = x.dtype.itemsize
    row_bytes = D * itemsize

    if S <= 8:
        ts = S                                    # full dim -> legal sublane block
    else:
        ts_budget = max(8, _round_down(budget // row_bytes, 8))
        ts = min(ts_budget, max(8, _round_down(S, 8)))
        # Keep >= 2 grid steps so both v7x TensorCores get work on big inputs.
        if _cdiv(S, ts) * B == 1 and S >= 16:
            ts = _round_up(_cdiv(S, 2), 8)

    grid = (_cdiv(S, ts), B)                      # seq blocks OUTER, batch INNER
    return pl.pallas_call(
        _add_pe_kernel,
        out_shape=jax.ShapeDtypeStruct((B, S, D), x.dtype),
        grid_spec=pltpu.PrefetchScalarGridSpec(
            num_scalar_prefetch=0,
            grid=grid,
            in_specs=[
                pl.BlockSpec((1, ts, D), lambda s, b: (b, s, 0)),   # x tile
                pl.BlockSpec((ts, D), lambda s, b: (s, 0)),         # pe tile (resident over b)
            ],
            out_specs=pl.BlockSpec((1, ts, D), lambda s, b: (b, s, 0)),
        ),
        compiler_params=pltpu.CompilerParams(
            dimension_semantics=("parallel", "parallel"),
        ),
    )(x, pe)


# ---------------------------------------------------------------------------
# "flat" path: fold S and D so the lane axis is large and dense
# ---------------------------------------------------------------------------
def _forward_flat(x: jnp.ndarray, pe: jnp.ndarray, budget: int) -> jnp.ndarray:
    B, S, D = x.shape
    itemsize = x.dtype.itemsize
    L = S * D
    L_pad = _round_up(L, 128)

    x2d = x.reshape(B, L)           # free XLA reshapes outside the kernel
    pe2d = pe.reshape(1, L)

    # Wide (lane-dense) columns first: widest multiple-of-128 tile such that one
    # 8-sublane-padded buffer stays under budget (this also bounds the pe tile,
    # whose single row pads to 8 sublanes in VMEM).
    tb = B if B <= 8 else 8
    tl = max(128, _round_down(budget // (8 * itemsize), 128))
    tl = min(tl, L_pad)

    # Then grow rows if the (padded) row already spans L and batch is large.
    if B > 8:
        tb = max(8, _round_down(budget // (tl * itemsize), 8))
        tb = min(tb, max(8, _round_down(B, 8)))

    # Keep >= 2 grid steps for v7x megacore on big single-block shapes.
    if _cdiv(L, tl) * _cdiv(B, tb) == 1 and L_pad >= 1024:
        half = _round_up(_cdiv(L, 2), 128)
        if half < tl:
            tl = half

    grid = (_cdiv(L, tl), _cdiv(B, tb))           # column blocks OUTER, batch INNER
    out2d = pl.pallas_call(
        _add_pe_kernel,
        out_shape=jax.ShapeDtypeStruct((B, L), x.dtype),
        grid_spec=pltpu.PrefetchScalarGridSpec(
            num_scalar_prefetch=0,
            grid=grid,
            in_specs=[
                pl.BlockSpec((tb, tl), lambda l, b: (b, l)),   # x tile
                pl.BlockSpec((1, tl), lambda l, b: (0, l)),    # pe tile (resident over b)
            ],
            out_specs=pl.BlockSpec((tb, tl), lambda l, b: (b, l)),
        ),
        compiler_params=pltpu.CompilerParams(
            dimension_semantics=("parallel", "parallel"),
        ),
    )(x2d, pe2d)
    return out2d.reshape(B, S, D)


# ---------------------------------------------------------------------------
# Public forward
# ---------------------------------------------------------------------------
def positional_encoding_forward(x: jnp.ndarray, pe_table: jnp.ndarray) -> jnp.ndarray:
    """x: (B, S, D); pe_table: (>=S, D).  Returns x + pe_table[:S] broadcast over B."""
    B, S, D = x.shape
    # No-op when the module hands us the per-dtype cached table; keeps the add
    # (deliberately) in x's dtype.
    pe = pe_table[:S, :].astype(x.dtype)
    budget = _tile_budget_bytes()
    if B < 8 and D % 128 == 0:
        return _forward_rows(x, pe, budget)
    return _forward_flat(x, pe, budget)


class PositionalEncodingPallas:
    """Mirrors PyTorch PositionalEncoding: forward returns x + pe[:, :S, :].squeeze(0).

    The reference forward never applies self.dropout, so none is applied here.
    Note: the add runs in x.dtype (pe pre-cast once per dtype); for sub-f32
    inputs PyTorch promotion would instead up-cast to f32 -- deliberate choice.
    """
    # TODO(synk): if the reference were changed to call self.dropout in forward,
    # it would need a pltpu.prng_* mask fused into this add kernel.

    def __init__(self, d_model: int, dropout: float = 0.1, max_len: int = 5000):
        self.pe = _build_pe(d_model, max_len)                  # (max_len, d_model) f32
        self._pe_cache = {jnp.dtype(jnp.float32): self.pe}

    def _pe_for(self, dtype):
        dt = jnp.dtype(dtype)
        if dt not in self._pe_cache:
            self._pe_cache[dt] = self.pe.astype(dt)            # cast once per dtype
        return self._pe_cache[dt]

    def __call__(self, x: jnp.ndarray) -> jnp.ndarray:
        return positional_encoding_forward(x, self._pe_for(x.dtype))


if __name__ == "__main__":
    key = jax.random.PRNGKey(0)

    # 1) Small shape, D not a multiple of 128 -> flat (B, S*D) path.
    B, S, D = 2, 8, 32
    x = jax.random.normal(key, (B, S, D), dtype=jnp.float32)
    mod = PositionalEncodingPallas(d_model=D, dropout=0.1, max_len=5000)
    out = jax.block_until_ready(mod(x))
    ref = x + mod.pe[:S, :][None, :, :]
    assert out.shape == (B, S, D)
    assert jnp.allclose(out, ref, atol=1e-6), "mismatch (flat path, small shape)"

    # 2) Small batch, lane-dense D -> rows (1, ts, D) path.
    B2, S2, D2 = 4, 64, 128
    x2 = jax.random.normal(jax.random.PRNGKey(1), (B2, S2, D2), dtype=jnp.float32)
    mod2 = PositionalEncodingPallas(d_model=D2, max_len=5000)
    out2 = jax.block_until_ready(mod2(x2))
    ref2 = x2 + mod2.pe[:S2, :][None, :, :]
    assert jnp.allclose(out2, ref2, atol=1e-6), "mismatch (rows path)"

    # 3) Ragged cdiv tiling: S*D not a multiple of 128, B not a multiple of 8.
    B3, S3, D3 = 12, 10, 48
    x3 = jax.random.normal(jax.random.PRNGKey(2), (B3, S3, D3), dtype=jnp.float32)
    mod3 = PositionalEncodingPallas(d_model=D3, max_len=64)
    out3 = jax.block_until_ready(mod3(x3))
    ref3 = x3 + mod3.pe[:S3, :][None, :, :]
    assert jnp.allclose(out3, ref3, atol=1e-6), "mismatch (ragged flat path)"

    print("KERNEL_OK")
</pallas_src>

<mosaic_0001>
module attributes {stable_mosaic.version = 11 : i64} {
  func.func @_add_pe_kernel(%arg0: i32, %arg1: i32, %arg2: memref<2x256xf32, #tpu.memory_space<vmem>>, %arg3: memref<1x256xf32, #tpu.memory_space<vmem>>, %arg4: memref<2x256xf32, #tpu.memory_space<vmem>>) attributes {dimension_semantics = [#tpu.dimension_semantics<parallel>, #tpu.dimension_semantics<parallel>], iteration_bounds = array<i64: 1, 1>, scalar_prefetch = 0 : i64, scratch_operands = 0 : i64, tpu.core_type = #tpu.core_type<tc>, window_params = [{transform_indices = @transform_0, window_bounds = array<i64: 2, 256>}, {transform_indices = @transform_1, window_bounds = array<i64: 1, 256>}, {transform_indices = @transform_2, window_bounds = array<i64: 2, 256>}]} {
    %c0 = arith.constant 0 : index
    %c0_0 = arith.constant 0 : index
    %0 = vector.load %arg2[%c0, %c0_0] : memref<2x256xf32, #tpu.memory_space<vmem>>, vector<2x256xf32>
    %c0_1 = arith.constant 0 : index
    %c0_2 = arith.constant 0 : index
    %1 = vector.load %arg3[%c0_1, %c0_2] : memref<1x256xf32, #tpu.memory_space<vmem>>, vector<1x256xf32>
    %2 = vector.broadcast %1 : vector<1x256xf32> to vector<2x256xf32>
    %3 = arith.addf %0, %2 : vector<2x256xf32>
    %c0_3 = arith.constant 0 : index
    %c0_4 = arith.constant 0 : index
    %4 = vector.load %arg4[%c0_3, %c0_4] : memref<2x256xf32, #tpu.memory_space<vmem>>, vector<2x256xf32>
    tpu.vector_store %arg4[%c0_3, %c0_4], %3 {strides = array<i32>} : memref<2x256xf32, #tpu.memory_space<vmem>>, vector<2x256xf32>,
    return
  }
  func.func @transform_0(%arg0: i32, %arg1: i32) -> (i32, i32) {
    %c0_i32 = arith.constant 0 : i32
    return %arg1, %arg0 : i32, i32
  }
  func.func @transform_1(%arg0: i32, %arg1: i32) -> (i32, i32) {
    %c0_i32 = arith.constant 0 : i32
    %c0_i32_0 = arith.constant 0 : i32
    return %c0_i32, %arg0 : i32, i32
  }
  func.func @transform_2(%arg0: i32, %arg1: i32) -> (i32, i32) {
    %c0_i32 = arith.constant 0 : i32
    return %arg1, %arg0 : i32, i32
  }
}

</mosaic_0001>

<bundles_post_ra>
// kernel: tpu_custom_call.1
= control target key start
LH: loop header
LB: loop body
LE: loop exit
PB: predicated region body
PF: predicated region fallthrough
CT: control target
= control target key end

     0   :  { %7 = vsyncpa [#allocation3], 0  ;;  %s172_s0 = inlined_call_operand.hbm [shape: f32[2,256], index: 0, kind: input, shape index: {}]   ;;  %s173_s1 = inlined_call_operand.hbm [shape: f32[1,256], index: 1, kind: input, shape index: {}]   ;;  %s174_s2 = inlined_call_operand.hbm [shape: f32[2,256], index: 2, kind: output, shape index: {}]  }
   0x1   :  { %8 = vsyncpa [#allocation6], 0 }
   0x2   :  { %9 = vsyncpa [#allocation4], 0  ;;  %s144_s9 = smov [#allocation2]   ;;  %s145_s11 = smov [#allocation5]  }
   0x3   :  { %s16_s10 = sshll.u32 %s144_s9, 4  ;;  %s26_s12 = sshll.u32 %s145_s11, 4  ;;  %s17_s10 = int_to_ptr.vmem [resolvable:$true] %s16_s10  ;;  %s27_s12 = int_to_ptr.vmem [resolvable:$true] %s26_s12 }
   0x4   :  { %s86_s13 = scalar_lea.vmem %s17_s10, 64  ;;  %p91_p1 = scmp.lt.s32.totalorder %s17_s10, %s17_s10 }
   0x5   :  { %p87_p0 = scmp.ne.s32.totalorder %s17_s10, %s86_s13  ;;  %p92_p2 = scmp.lt.s32.totalorder %s86_s13, %s86_s13 }
   0x7   :  { %p93_p3 = por %p92_p2, %p91_p1 }
   0x9   :  { %p94_p4 = pnand %p93_p3, %p87_p0 }
   0xb   :  { %97 = shalt.err (!%p94_p4)
}
   0xc   :  { %19 = dma.hbm_to_vmem [thread:$0]  %s172_s0, 64, %s17_s10, [#allocation3]  }
   0xd   :  { %s106_s16 = scalar_lea.vmem %s27_s12, 32  ;;  %p111_p6 = scmp.lt.s32.totalorder %s27_s12, %s27_s12 }
   0xe   :  { %p107_p5 = scmp.ne.s32.totalorder %s27_s12, %s106_s16  ;;  %p112_p7 = scmp.lt.s32.totalorder %s106_s16, %s106_s16 }
  0x10   :  { %p113_p8 = por %p112_p7, %p111_p6 }
  0x12   :  { %p114_p9 = pnand %p113_p8, %p107_p5 }
  0x14   :  { %117 = shalt.err (!%p114_p9)
}
  0x15   :  { %29 = dma.hbm_to_vmem [thread:$0]  %s173_s1, 32, %s27_s12, [#allocation6]  }
  0x16   :  { %138 = dma.done.wait [#allocation3], 64  }
  0x17   :  { %139 = vsyncadd [#allocation3], 4294967232 }
  0x18   :  { %140 = dma.done.wait [#allocation6], 32  }
  0x19   :  { %141 = vsyncadd [#allocation6], 4294967264  ;;  %v39_v0 = vlaneseq  ;;  %v146_v1 = vmov 1983009808   ;;  %v37_v7 = vld [vmem:[#allocation5] sm:$0x3] }
  0x1a   :  { %v49_v2 = vunpack.c.l.s4 %v146_v1  ;;  %v36_v12 = vld [vmem:[#allocation2] sm:$0xf]  ;;  %s147_s0 = smov [#allocation7]  }
  0x1b   :  { %v40_v3 = vshrl.u32 %v39_v0, 7  ;;  %s64_s19 = sshll.u32 %s147_s0, 4  ;;  %s65_s19 = int_to_ptr.vmem [resolvable:$true] %s64_s19 }
  0x1c   :  { %v50_v6 = vunpack.c.0.s8 %v49_v2  ;;  %s118_s1 = scalar_lea.vmem %s65_s19, 64  ;;  %p123_p11 = scmp.lt.s32.totalorder %s65_s19, %s65_s19 }
  0x1d   :  { %v41_v4 = vsub.s32 0, %v40_v3  ;;  %v45_v5 = vsub.s32 1, %v40_v3  ;;  %p119_p10 = scmp.ne.s32.totalorder %s65_s19, %s118_s1  ;;  %p124_p12 = scmp.lt.s32.totalorder %s118_s1, %s118_s1 }
  0x1e   :  { %v53_v10 = vsub.s32 %v50_v6, %v40_v3 }
  0x1f   :  { %v42_v8 = vrot.slane %v37_v7, %v41_v4  ;;  %v46_v9 = vrot.slane %v37_v7, %v45_v5  ;;  %p125_p13 = por %p124_p12, %p123_p11 }
  0x21   :  { %v47_v11 = vcombine.low %v42_v8, %v46_v9  ;;  %p126_p0 = pnand %p125_p13, %p119_p10 }
  0x23   :  { %v54_v13 = vrot.slane %v47_v11, %v53_v10 }
  0x25   :  { %v56_v14 = vadd.f32 %v54_v13, %v36_v12 }
  0x27   :  { %57 = vst [vmem:[#allocation7] sm:$0xf] %v56_v14 }
  0x28   :  { %129 = shalt.err (!%p126_p0)
}
  0x29   :  { %67 = dma.vmem_to_hbm [thread:$0]  %s65_s19, 64, %s174_s2, [#allocation4]  }
  0x2a   :  { %142 = dma.done.wait [#allocation4], 64  }
  0x2b   :  { %143 = vsyncadd [#allocation4], 4294967232 }
  0x2c   :  { %71 = vsyncpa [#allocation3], 1 }
  0x2d   :  { %72 = vsyncpa [#allocation6], 1 }
  0x2e   :  { %73 = vsyncpa [#allocation4], 1 }

</bundles_post_ra>
